<compile_context>
chip_gen: v7x
topology: tpu7x:2x2x1
jax: 0.10.0
libtpu: 0.0.40
codegen_flags: <defaults>
</compile_context>

<pallas_src>
import math
import jax
import jax.numpy as jnp
import numpy as np
from jax.experimental import pallas as pl
from jax.experimental.pallas import tpu as pltpu

# ------------------------- small, module-consistent config ------------------
B = 2            # batch
S = 8            # sequence length
N_EMBD = 32      # gpt2_model.config.n_embd (stand-in)
HIDDEN = 64      # hidden_size (divisible by num_heads=8)
NUM_HEADS = 8
HEAD_DIM = HIDDEN // NUM_HEADS
NUM_RULES = 4
NUM_CLASSES = 5
VOCAB = 50
PAD_C = 128                       # lane-dense classifier width (sliced back to NUM_CLASSES)
NHR = NUM_HEADS * NUM_RULES       # 32 grouped score lanes
WX_LANES = 256                    # fused x-side RHS: [Wp@Wc (128) | W_scores (32) | 0-pad]

# misc slab row offsets (all 8-aligned)
_VOC_R, _GSUM_R, _BIAS_R, _BSC_R = 0, 32, 64, 72
_MISC_ROWS = 80


# ------------------------------ Pallas kernel --------------------------------
def _reasoner_kernel(hs_ref, wx_ref, misc_ref, logits_ref):
    # last-token selection inside the kernel (only that row feeds the classifier)
    x = hs_ref[:, S - 1, :]                                              # (B, N_EMBD)

    # one fused x-side GEMM: lanes [0:128) = classifier partial x@(Wp@Wc),
    # lanes [128:160) = attention scores x@(Wp@Wq_s@K').  Single MXU pass on v6e/v7x.
    xw = jnp.dot(x, wx_ref[...], preferred_element_type=jnp.float32)     # (B, 256)
    logits_x = xw[:, :PAD_C]                                             # (B, 128)
    scores = xw[:, PAD_C:PAD_C + NHR] + misc_ref[_BSC_R:_BSC_R + 1, :NHR]  # (B, 32)

    # grouped (per-head) softmax: a row-wide max is a per-row constant that cancels
    # exactly inside every head's softmax (no reshape / transpose needed); the denom
    # clamp guards the pathological all-head-underflow case flagged in review.
    m = jnp.max(scores, axis=-1, keepdims=True)
    p = jnp.exp(scores - m)
    denom = jnp.dot(p, misc_ref[_GSUM_R:_GSUM_R + NHR, :NHR],
                    preferred_element_type=jnp.float32)                  # per-head sums, broadcast
    denom = jnp.maximum(denom, 1e-30)
    attn = p * pl.reciprocal(denom, approx=False)                        # (B, 32)

    # rule-value path fused with the MHA out-projection AND classifier: attn @ (Vo@Wc)
    rule_term = jnp.dot(attn, misc_ref[_VOC_R:_VOC_R + NHR, :],
                        preferred_element_type=jnp.float32)              # (B, 128)

    # residual + biases already folded into logits_x / bias row; lane-dense store
    logits_ref[...] = logits_x + rule_term + misc_ref[_BIAS_R:_BIAS_R + 1, :]


# --------------------- one-time parameter folding (init-time) ----------------
def fold_params(params):
    """Parameter-only algebra, computed ONCE at init — not in the per-call path."""
    scale = 1.0 / math.sqrt(HEAD_DIM)           # PyTorch MHA: scale applied after q in-proj
    wq_s = params["wq"] * scale
    bq_s = params["bq"] * scale

    k = params["rules"] @ params["wk"] + params["bk"]                    # (R, H)
    v = params["rules"] @ params["wv"] + params["bv"]                    # (R, H)

    kh = k.reshape(NUM_RULES, NUM_HEADS, HEAD_DIM)
    eye = jnp.eye(NUM_HEADS, dtype=jnp.float32)
    # K'[h*D+d, g*R+r] = delta_{h,g} * k[r, h*D+d]   (block-diagonal key matrix)
    kp = jnp.einsum("rhd,hg->hdgr", kh, eye).reshape(HIDDEN, NHR)

    vh = v.reshape(NUM_RULES, NUM_HEADS, HEAD_DIM)
    wo_h = params["wo"].reshape(NUM_HEADS, HEAD_DIM, HIDDEN)
    # Vo[h*R+r, :] = v[r, h*D:(h+1)*D] @ Wo[h*D:(h+1)*D, :]
    vo = jnp.einsum("rhd,hdo->hro", vh, wo_h).reshape(NHR, HIDDEN)

    # classifier, zero-padded to a lane-dense 128-wide output
    wc_pad = jnp.zeros((HIDDEN, PAD_C), jnp.float32).at[:, :NUM_CLASSES].set(params["wc"])
    bc_pad = jnp.zeros((1, PAD_C), jnp.float32).at[:, :NUM_CLASSES].set(params["bc"])

    # full query-path fold: scores = x @ w_scores + b_scores
    w_scores = params["wp"] @ wq_s @ kp                                  # (E, 32)
    b_scores = (params["bp"] @ wq_s + bq_s) @ kp                         # (1, 32)

    # output-projection + residual + classifier fold: logits = x@wpc + attn@voc + bias
    wpc = params["wp"] @ wc_pad                                          # (E, 128)
    voc = vo @ wc_pad                                                    # (32, 128)
    bias = (params["bp"] + params["bo"]) @ wc_pad + bc_pad               # (1, 128)

    # block-diagonal ones matrix: p @ gsum = per-head sum broadcast over its group
    gsum = jnp.kron(jnp.eye(NUM_HEADS, dtype=jnp.float32),
                    jnp.ones((NUM_RULES, NUM_RULES), jnp.float32))       # (32, 32)

    # pack everything into two lane-dense slabs -> 3 input DMAs total per call
    wx = jnp.zeros((N_EMBD, WX_LANES), jnp.float32)
    wx = wx.at[:, :PAD_C].set(wpc).at[:, PAD_C:PAD_C + NHR].set(w_scores)

    misc = jnp.zeros((_MISC_ROWS, PAD_C), jnp.float32)
    misc = misc.at[_VOC_R:_VOC_R + NHR, :].set(voc)
    misc = misc.at[_GSUM_R:_GSUM_R + NHR, :NHR].set(gsum)
    misc = misc.at[_BIAS_R, :].set(bias[0])
    misc = misc.at[_BSC_R, :NHR].set(b_scores[0])

    return {"wx": wx, "misc": misc}


# ------------------------------ per-call wrapper ------------------------------
@jax.jit
def neuro_symbolic_reasoner(last_hidden_state, wx, misc):
    """last_hidden_state: (B, S, N_EMBD) f32 -> logits (B, NUM_CLASSES)."""
    vmem = pl.BlockSpec(memory_space=pltpu.MemorySpace.VMEM)
    logits_pad = pl.pallas_call(
        _reasoner_kernel,
        out_shape=jax.ShapeDtypeStruct((B, PAD_C), jnp.float32),
        in_specs=[vmem, vmem, vmem],
        out_specs=vmem,
    )(last_hidden_state.astype(jnp.float32), wx, misc)
    return logits_pad[:, :NUM_CLASSES]


# ------------------------------ glue (plain JAX) -----------------------------
def gpt2_stub(input_ids, attention_mask, wte, wpe):
    # TODO(synk): full GPT-2 transformer stack not reimplemented; deterministic
    # token+position embedding stand-in producing last_hidden_state (B,S,n_embd).
    h = wte[input_ids] + wpe[jnp.arange(S)][None, :, :]
    return h * attention_mask[:, :, None].astype(h.dtype)


def reference(last_hidden_state, p):
    """Pure-JAX reference of the full post-GPT2 forward pass (for validation)."""
    x = last_hidden_state.reshape(B * S, N_EMBD)
    neural = x @ p["wp"] + p["bp"]
    q = (neural @ p["wq"] + p["bq"]) / math.sqrt(HEAD_DIM)
    k = p["rules"] @ p["wk"] + p["bk"]
    v = p["rules"] @ p["wv"] + p["bv"]
    qh = q.reshape(B * S, NUM_HEADS, HEAD_DIM)
    kh = k.reshape(NUM_RULES, NUM_HEADS, HEAD_DIM)
    vh = v.reshape(NUM_RULES, NUM_HEADS, HEAD_DIM)
    scores = jnp.einsum("nhd,rhd->nhr", qh, kh)
    attn = jax.nn.softmax(scores, axis=-1)
    oh = jnp.einsum("nhr,rhd->nhd", attn, vh).reshape(B * S, HIDDEN)
    attn_out = oh @ p["wo"] + p["bo"]
    combined = neural + attn_out
    last = combined.reshape(B, S, HIDDEN)[:, -1, :]
    return last @ p["wc"] + p["bc"]


def init_params(key):
    ks = jax.random.split(key, 12)
    n = lambda k, shape, s=0.02: (s * jax.random.normal(k, shape)).astype(jnp.float32)
    return {
        "rules": jax.random.normal(ks[0], (NUM_RULES, HIDDEN)).astype(jnp.float32),
        "wp": n(ks[1], (N_EMBD, HIDDEN)), "bp": jnp.zeros((1, HIDDEN), jnp.float32),
        "wq": n(ks[2], (HIDDEN, HIDDEN)), "bq": n(ks[3], (1, HIDDEN)),
        "wk": n(ks[4], (HIDDEN, HIDDEN)), "bk": n(ks[5], (1, HIDDEN)),
        "wv": n(ks[6], (HIDDEN, HIDDEN)), "bv": n(ks[7], (1, HIDDEN)),
        "wo": n(ks[8], (HIDDEN, HIDDEN)), "bo": n(ks[9], (1, HIDDEN)),
        "wc": n(ks[10], (HIDDEN, NUM_CLASSES)), "bc": jnp.zeros((1, NUM_CLASSES), jnp.float32),
    }


if __name__ == "__main__":
    key = jax.random.PRNGKey(0)
    k_ids, k_wte, k_wpe, k_params = jax.random.split(key, 4)

    input_ids = jax.random.randint(k_ids, (B, S), 0, VOCAB)
    attention_mask = jnp.ones((B, S), dtype=jnp.int32)

    wte = (0.02 * jax.random.normal(k_wte, (VOCAB, N_EMBD))).astype(jnp.float32)
    wpe = (0.02 * jax.random.normal(k_wpe, (S, N_EMBD))).astype(jnp.float32)
    params = init_params(k_params)

    # init-time: fold all parameter-only algebra once
    folded = fold_params(params)
    jax.block_until_ready(folded)

    last_hidden_state = gpt2_stub(input_ids, attention_mask, wte, wpe)

    logits = neuro_symbolic_reasoner(last_hidden_state, folded["wx"], folded["misc"])
    jax.block_until_ready(logits)

    ref = reference(last_hidden_state, params)
    np.testing.assert_allclose(np.asarray(logits), np.asarray(ref),
                               rtol=1e-3, atol=1e-4)
    print("KERNEL_OK")
</pallas_src>

<mosaic_0001>
module attributes {stable_mosaic.version = 11 : i64} {
  func.func @_reasoner_kernel(%arg0: memref<2x8x32xf32, #tpu.memory_space<vmem>>, %arg1: memref<32x256xf32, #tpu.memory_space<vmem>>, %arg2: memref<80x128xf32, #tpu.memory_space<vmem>>, %arg3: memref<2x128xf32, #tpu.memory_space<vmem>>) attributes {dimension_semantics = [], scalar_prefetch = 0 : i64, scratch_operands = 0 : i64, tpu.core_type = #tpu.core_type<tc>} {
    %c0 = arith.constant 0 : index
    %c7 = arith.constant 7 : index
    %c0_0 = arith.constant 0 : index
    %0 = vector.load %arg0[%c0, %c7, %c0_0] : memref<2x8x32xf32, #tpu.memory_space<vmem>>, vector<2x1x32xf32>
    %1 = vector.shape_cast %0 : vector<2x1x32xf32> to vector<2x32xf32>
    %c0_1 = arith.constant 0 : index
    %c0_2 = arith.constant 0 : index
    %2 = vector.load %arg1[%c0_1, %c0_2] : memref<32x256xf32, #tpu.memory_space<vmem>>, vector<32x256xf32>
    %cst = arith.constant dense<0.000000e+00> : vector<2x256xf32>
    %3 = tpu.matmul %1, %2, %cst {dimension_numbers = #tpu.dot_dimension_numbers<[1], [0], [0], [1], [0, 0, 1, 1], [], []>} : vector<2x32xf32>, vector<32x256xf32>, vector<2x256xf32> -> vector<2x256xf32>
    %4 = vector.extract_strided_slice %3 {offsets = [0, 0], sizes = [2, 128], strides = [1, 1]} : vector<2x256xf32> to vector<2x128xf32>
    %5 = vector.extract_strided_slice %3 {offsets = [0, 128], sizes = [2, 32], strides = [1, 1]} : vector<2x256xf32> to vector<2x32xf32>
    %c72 = arith.constant 72 : index
    %c0_3 = arith.constant 0 : index
    %6 = vector.load %arg2[%c72, %c0_3] : memref<80x128xf32, #tpu.memory_space<vmem>>, vector<1x32xf32>
    %7 = vector.broadcast %6 : vector<1x32xf32> to vector<2x32xf32>
    %8 = arith.addf %5, %7 : vector<2x32xf32>
    %cst_4 = arith.constant dense<0xFF800000> : vector<2xf32>
    %9 = vector.multi_reduction <maximumf>, %8, %cst_4 [1] : vector<2x32xf32> to vector<2xf32>
    %10 = vector.shape_cast %9 : vector<2xf32> to vector<2x1xf32>
    %11 = vector.broadcast %10 : vector<2x1xf32> to vector<2x32xf32>
    %12 = arith.subf %8, %11 : vector<2x32xf32>
    %13 = math.exp %12 : vector<2x32xf32>
    %c32 = arith.constant 32 : index
    %c0_5 = arith.constant 0 : index
    %14 = vector.load %arg2[%c32, %c0_5] : memref<80x128xf32, #tpu.memory_space<vmem>>, vector<32x32xf32>
    %cst_6 = arith.constant dense<0.000000e+00> : vector<2x32xf32>
    %15 = tpu.matmul %13, %14, %cst_6 {dimension_numbers = #tpu.dot_dimension_numbers<[1], [0], [0], [1], [0, 0, 1, 1], [], []>} : vector<2x32xf32>, vector<32x32xf32>, vector<2x32xf32> -> vector<2x32xf32>
    %cst_7 = arith.constant 1.000000e-30 : f32
    %16 = vector.broadcast %cst_7 : f32 to vector<2x32xf32>
    %17 = arith.maximumf %15, %16 : vector<2x32xf32>
    %18 = tpu.reciprocal %17 : vector<2x32xf32> -> vector<2x32xf32>
    %19 = arith.mulf %13, %18 : vector<2x32xf32>
    %c0_8 = arith.constant 0 : index
    %c0_9 = arith.constant 0 : index
    %20 = vector.load %arg2[%c0_8, %c0_9] : memref<80x128xf32, #tpu.memory_space<vmem>>, vector<32x128xf32>
    %cst_10 = arith.constant dense<0.000000e+00> : vector<2x128xf32>
    %21 = tpu.matmul %19, %20, %cst_10 {dimension_numbers = #tpu.dot_dimension_numbers<[1], [0], [0], [1], [0, 0, 1, 1], [], []>} : vector<2x32xf32>, vector<32x128xf32>, vector<2x128xf32> -> vector<2x128xf32>
    %22 = arith.addf %4, %21 : vector<2x128xf32>
    %c64 = arith.constant 64 : index
    %c0_11 = arith.constant 0 : index
    %23 = vector.load %arg2[%c64, %c0_11] : memref<80x128xf32, #tpu.memory_space<vmem>>, vector<1x128xf32>
    %24 = vector.broadcast %23 : vector<1x128xf32> to vector<2x128xf32>
    %25 = arith.addf %22, %24 : vector<2x128xf32>
    %c0_12 = arith.constant 0 : index
    %c0_13 = arith.constant 0 : index
    %26 = vector.load %arg3[%c0_12, %c0_13] : memref<2x128xf32, #tpu.memory_space<vmem>>, vector<2x128xf32>
    tpu.vector_store %arg3[%c0_12, %c0_13], %25 {strides = array<i32>} : memref<2x128xf32, #tpu.memory_space<vmem>>, vector<2x128xf32>,
    return
  }
}

</mosaic_0001>

<bundles_post_ra>
// kernel: neuro_symbolic_reasoner.1
= control target key start
LH: loop header
LB: loop body
LE: loop exit
PB: predicated region body
PF: predicated region fallthrough
CT: control target
= control target key end

     0   :  { %8 = vsyncpa [#allocation3], 0  ;;  %s587_s0 = inlined_call_operand.hbm [shape: f32[2,8,32], index: 0, kind: input, shape index: {}]   ;;  %s588_s1 = inlined_call_operand.hbm [shape: f32[32,256], index: 1, kind: input, shape index: {}]   ;;  %s589_s2 = inlined_call_operand.hbm [shape: f32[80,128], index: 2, kind: input, shape index: {}]   ;;  %s590_s3 = inlined_call_operand.hbm [shape: f32[2,128], index: 3, kind: output, shape index: {}]  }
   0x1   :  { %9 = vsyncpa [#allocation6], 0 }
   0x2   :  { %10 = vsyncpa [#allocation4], 0  ;;  %s505_s12 = smov [#allocation5]   ;;  %s411_s16 = scalar_lea.hbm %s588_s1, 1024 }
   0x3   :  { %s28_s13 = sshll.u32 %s505_s12, 4  ;;  %p412_p0 = scmp.ne.s32.totalorder %s588_s1, %s411_s16  ;;  %s29_s13 = int_to_ptr.vmem [resolvable:$true] %s28_s13 }
   0x4   :  { %p415_p1 = scmp.lt.u32.totalorder %s411_s16, %s588_s1 }
   0x6   :  { %p417_p2 = pnand %p415_p1, %p412_p0 }
   0x8   :  { %420 = shalt.err (!%p417_p2)
}
   0x9   :  { %s421_s21 = scalar_lea.vmem %s29_s13, 1024  ;;  %p426_p4 = scmp.lt.s32.totalorder %s29_s13, %s29_s13 }
   0xa   :  { %p422_p3 = scmp.ne.s32.totalorder %s29_s13, %s421_s21  ;;  %p427_p5 = scmp.lt.s32.totalorder %s421_s21, %s421_s21 }
   0xc   :  { %p428_p6 = por %p427_p5, %p426_p4 }
   0xe   :  { %p429_p7 = pnand %p428_p6, %p422_p3 }
  0x10   :  { %432 = shalt.err (!%p429_p7)
}
  0x11   :  { %s506_s22 = smov 256   ;;  %s507_s23 = smov 16  }
  0x12   :  { %34 = dma.hbm_to_vmem [thread:$0]  %s588_s1, 1024, %s29_s13, [#allocation6], %s506_s22, %s506_s22, %s507_s23  }
  0x13   :  { %s508_s26 = smov [#allocation2]   ;;  %s433_s30 = scalar_lea.hbm %s587_s0, 256 }
  0x14   :  { %s16_s27 = sshll.u32 %s508_s26, 4  ;;  %p434_p8 = scmp.ne.s32.totalorder %s587_s0, %s433_s30  ;;  %s17_s27 = int_to_ptr.vmem [resolvable:$true] %s16_s27 }
  0x15   :  { %p437_p9 = scmp.lt.u32.totalorder %s433_s30, %s587_s0 }
  0x17   :  { %p439_p10 = pnand %p437_p9, %p434_p8 }
  0x19   :  { %442 = shalt.err (!%p439_p10)
}
  0x1a   :  { %s443_s8 = scalar_lea.vmem %s17_s27, 256  ;;  %p448_p12 = scmp.lt.s32.totalorder %s17_s27, %s17_s27 }
  0x1b   :  { %p444_p11 = scmp.ne.s32.totalorder %s17_s27, %s443_s8  ;;  %p449_p13 = scmp.lt.s32.totalorder %s443_s8, %s443_s8 }
  0x1d   :  { %p450_p0 = por %p449_p13, %p448_p12 }
  0x1f   :  { %p451_p1 = pnand %p450_p0, %p444_p11 }
  0x21   :  { %454 = shalt.err (!%p451_p1)
}
  0x22   :  { %s509_s1 = smov 128   ;;  %s510_s9 = smov 8  }
  0x23   :  { %22 = dma.hbm_to_vmem [thread:$0]  %s587_s0, 256, %s17_s27, [#allocation3], %s509_s1, %s509_s1, %s510_s9  }
  0x24   :  { %s511_s12 = smov [#allocation7]   ;;  %s455_s16 = scalar_lea.hbm %s589_s2, 1280 }
  0x25   :  { %s40_s13 = sshll.u32 %s511_s12, 4  ;;  %p456_p2 = scmp.ne.s32.totalorder %s589_s2, %s455_s16  ;;  %s41_s13 = int_to_ptr.vmem [resolvable:$true] %s40_s13 }
  0x26   :  { %p459_p3 = scmp.lt.u32.totalorder %s455_s16, %s589_s2 }
  0x28   :  { %p461_p4 = pnand %p459_p3, %p456_p2 }
  0x2a   :  { %464 = shalt.err (!%p461_p4)
}
  0x2b   :  { %s465_s21 = scalar_lea.vmem %s41_s13, 1280  ;;  %p470_p6 = scmp.lt.s32.totalorder %s41_s13, %s41_s13 }
  0x2c   :  { %p466_p5 = scmp.ne.s32.totalorder %s41_s13, %s465_s21  ;;  %p471_p7 = scmp.lt.s32.totalorder %s465_s21, %s465_s21 }
  0x2e   :  { %p472_p8 = por %p471_p7, %p470_p6 }
  0x30   :  { %p473_p9 = pnand %p472_p8, %p466_p5 }
  0x32   :  { %476 = shalt.err (!%p473_p9)
}
  0x33   :  { %46 = dma.hbm_to_vmem [thread:$0]  %s589_s2, 1280, %s41_s13, [#allocation6], %s509_s1, %s509_s1, %s510_s9  }
  0x34   :  { %499 = dma.done.wait [#allocation3], 256  }
  0x35   :  { %500 = vsyncadd [#allocation3], 4294967040 }
  0x36   :  { %501 = dma.done.wait [#allocation6], 2304  }
  0x37   :  { %502 = vsyncadd [#allocation6], 4294964992  ;;  %v512_v0 = vmov 0.0   ;;  %v59_v1 = vld [vmem:[#allocation5 + $0x8] sm:$0xff]  ;;  %v61_v2 = vld [vmem:[#allocation5 + $0x18] sm:$0xff]  ;;  %vm69_vm0 = vcmask 1041409  }
  0x38   :  { %138 = vmatprep.mubr.f32.mxu0 %v512_v0  ;;  %v58_v3 = vld [vmem:[#allocation5] sm:$0xff]  ;;  %v376_v4 = vpack.c.bf16 %v61_v2, %v59_v1  ;;  %v60_v5 = vld [vmem:[#allocation5 + $0x10] sm:$0xff]  ;;  %v63_v6 = vld [vmem:[#allocation5 + $0x28] sm:$0xff]  ;;  %vm71_vm1 = vcmask 261120   ;;  %vm151_vm2 = vcmask 254976   ;;  %v513_v25 = vmov 0.0|0.0  }
  0x39   :  { %v65_v7 = vld [vmem:[#allocation5 + $0x38] sm:$0xff]  ;;  %v378_v8 = vpack.c.bf16 %v60_v5, %v58_v3  ;;  %v62_v10 = vld [vmem:[#allocation5 + $0x20] sm:$0xff]  ;;  %v64_v11 = vld [vmem:[#allocation5 + $0x30] sm:$0xff]  ;;  %384 = vmatprep.subr.bf16.mxu1 %v513_v25  ;;  %vm514_vm3 = vmmov 0   ;;  %s515_s2 = smov [#allocation8]  }
  0x3a   :  { %v380_v9 = vpack.c.bf16 %v65_v7, %v63_v6  ;;  %377 = vmatprep.subr.bf16.mxu0 %v376_v4  ;;  %v57_v12 = vld [vmem:[#allocation2 + $0xf] sm:$0x1]  ;;  %v382_v13 = vpack.c.bf16 %v64_v11, %v62_v10  ;;  %v56_v15 = vld [vmem:[#allocation2 + $0x7] sm:$0x1]  ;;  %v340_v17 = vld [vmem:[#allocation7 + $0x48] ss:$0 sm:$0xff]  ;;  %362 = vmatprep.mubr.msk.f32.mxu1 %vm514_vm3, %v512_v0 }
  0x3b   :  { %379 = vmatpush1.bf16.msra.mxu0 %v378_v8  ;;  %v68_v14 = vrot.slane %v57_v12, 7  ;;  %v158_v22 = vld [vmem:[#allocation7 + $0x20] sm:$0xff]  ;;  %v159_v23 = vld [vmem:[#allocation7 + $0x28] sm:$0xff]  ;;  %v160_v24 = vld [vmem:[#allocation7 + $0x30] sm:$0xff]  ;;  %s329_s23 = sshll.u32 %s515_s2, 4  ;;  %s330_s23 = int_to_ptr.vmem [resolvable:$true] %s329_s23 }
  0x3c   :  { %381 = vmatprep.subr.bf16.mxu0 %v380_v9  ;;  %v385_v26 = vpack.c.bf16 %v159_v23, %v158_v22  ;;  %v161_v27 = vld [vmem:[#allocation7 + $0x38] sm:$0xff]  ;;  %v238_v33 = vld [vmem:[#allocation7] sm:$0xff]  ;;  %v239_v34 = vld [vmem:[#allocation7 + $0x8] sm:$0xff]  ;;  %s477_s24 = scalar_lea.vmem %s330_s23, 32  ;;  %p482_p11 = scmp.lt.s32.totalorder %s330_s23, %s330_s23 }
  0x3d   :  { %v70_v16 = vsel %vm69_vm0, %v68_v14, %v56_v15  ;;  %v388_v28 = vpack.c.bf16 %v161_v27, %v160_v24  ;;  %v240_v35 = vld [vmem:[#allocation7 + $0x10] sm:$0xff]  ;;  %v391_v36 = vpack.c.bf16 %v239_v34, %v238_v33  ;;  %v241_v37 = vld [vmem:[#allocation7 + $0x18] sm:$0xff]  ;;  %v343_v45 = vld [vmem:[#allocation7 + $0x40] ss:$0 sm:$0xff]  ;;  %p478_p10 = scmp.ne.s32.totalorder %s330_s23, %s477_s24  ;;  %p483_p12 = scmp.lt.s32.totalorder %s477_s24, %s477_s24 }
  0x3e   :  { %386 = vmatpush3.bf16.msra.mxu1 %v385_v26  ;;  %v394_v38 = vpack.c.bf16 %v241_v37, %v240_v35 }
  0x3f   :  { %383 = vmatpush1.bf16.msra.mxu0 %v382_v13  ;;  %387 = vmatprep.subr.bf16.mxu1 %v513_v25  ;;  %p484_p13 = por %p483_p12, %p482_p11 }
  0x40   :  { %390 = vmatprep.subr.bf16.mxu0 %v513_v25 }
  0x41   :  { %p485_p0 = pnand %p484_p13, %p478_p10 }
  0x42   :  { %339 = vmatmul.mubr.msk.f32.vlgmr.msra.gmra.mrb[0].mxu0 %vm71_vm1, %v70_v16  ;;  %389 = vmatpush3.bf16.msra.mxu1 %v388_v28 }
  0x43   :  { %373 = vmatprep.mubr.msk.f32.mxu0 %vm514_vm3, %v512_v0  ;;  %392 = vmatpush3.bf16.msra.mxu0 %v391_v36 }
  0x44   :  { %393 = vmatprep.subr.bf16.mxu0 %v513_v25 }
  0x47   :  { %395 = vmatpush3.bf16.msra.mxu0 %v394_v38 }
 0x115   :  { %v140_v18 = vpop.f32.mrb[0].mxu0 }
 0x116   :  { %v142_v19 = vpop.f32.mrb[1].mxu0 }
 0x117   :  { %v150_v20 = vadd.f32 %v340_v17, %v142_v19 }
 0x119   :  { %v152_v21 = vsel %vm151_vm2, %v150_v20, -inf }
 0x11a   :  { %153 = vmax.xlane.f32.xlu0 %v152_v21 }
 0x1a7   :  { %v154_v29 = vpop.xlane.xlu0 %153 }
 0x1a8   :  { %v155_v30 = vsub.f32 %v150_v20, %v154_v29 }
 0x1aa   :  { %v156_v31 = vmul.f32 1.442695, %v155_v30 }
 0x1ac   :  { %407 = vpow2.f32 %v156_v31 }
 0x1b6   :  { %v408_v32 = vpop.eup %407 }
 0x1b7   :  { %363 = vmatmul.mubr.msk.f32.vlgmr.msra.gmra.mrb[0].mxu1 %vm71_vm1, %v408_v32 }
 0x28a   :  { %v231_v39 = vpop.f32.mrb[0].mxu1 }
 0x28b   :  { %v235_v40 = vmax.f32 %v231_v39, 1e-30  ;;  %v364_v41 = vpop.f32.mrb[1].mxu1 }
 0x28d   :  { %409 = vrcp.f32 %v235_v40 }
 0x297   :  { %v410_v42 = vpop.eup %409 }
 0x298   :  { %v237_v43 = vmul.f32 %v410_v42, %v408_v32 }
 0x29a   :  { %374 = vmatmul.mubr.msk.f32.vlgmr.msra.gmra.mrb[2].mxu0 %vm71_vm1, %v237_v43 }
 0x36d   :  { %v311_v44 = vpop.f32.mrb[2].mxu0 }
 0x36e   :  { %v315_v46 = vadd.f32 %v311_v44, %v140_v18  ;;  %v375_v47 = vpop.f32.mrb[3].mxu0 }
 0x370   :  { %v321_v48 = vadd.f32 %v343_v45, %v315_v46 }
 0x372   :  { %322 = vst [vmem:[#allocation8] sm:$0x3] %v321_v48 }
 0x373   :  { %488 = shalt.err (!%p485_p0)
}
 0x374   :  { %s489_s27 = scalar_lea.hbm %s590_s3, 32 }
 0x375   :  { %p490_p1 = scmp.ne.s32.totalorder %s590_s3, %s489_s27  ;;  %p493_p2 = scmp.lt.u32.totalorder %s489_s27, %s590_s3 }
 0x377   :  { %p495_p3 = pnand %p493_p2, %p490_p1 }
 0x379   :  { %498 = shalt.err (!%p495_p3)
}
 0x37a   :  { %332 = dma.vmem_to_hbm [thread:$0]  %s330_s23, 32, %s590_s3, [#allocation4]  }
 0x37b   :  { %503 = dma.done.wait [#allocation4], 32  }
 0x37c   :  { %504 = vsyncadd [#allocation4], 4294967264 }
 0x37d   :  { %336 = vsyncpa [#allocation3], 1 }
 0x37e   :  { %337 = vsyncpa [#allocation6], 1 }
 0x37f   :  { %338 = vsyncpa [#allocation4], 1 }

</bundles_post_ra>
